<compile_context>
chip_gen: v5e
topology: v5e:2x2
jax: 0.10.0
libtpu: 0.0.40
codegen_flags: <defaults>
</compile_context>

<pallas_src>
import functools

import jax
import jax.numpy as jnp
from jax.experimental import pallas as pl
from jax.experimental.pallas import tpu as pltpu


def mlp_intermediate_kernel(x_ref, w_ref, b_ref, gamma_ref, beta_ref, o_ref):
    # x_ref:     (tm, D_in)   input rows tile (native dtype)
    # w_ref:     (D_in, H)    dense weight (transposed vs torch, native dtype)
    # b_ref:     (1, H)       dense bias
    # gamma_ref: (1, H)       layernorm weight
    # beta_ref:  (1, H)       layernorm bias
    # o_ref:     (tm, H)      output tile

    # Dense: feed native-dtype operands to the MXU, accumulate in f32.
    h = jnp.dot(x_ref[...], w_ref[...], preferred_element_type=jnp.float32)
    h = h + b_ref[...].astype(jnp.float32)

    # Single-pass LayerNorm over the hidden axis (f32, eps = torch default 1e-5).
    inv_h = 1.0 / h.shape[-1]
    s1 = jnp.sum(h, axis=-1, keepdims=True)
    s2 = jnp.sum(h * h, axis=-1, keepdims=True)
    mean = s1 * inv_h
    var = jnp.maximum(s2 * inv_h - mean * mean, 0.0)
    inv_std = jax.lax.rsqrt(var + 1e-5)
    hn = (h - mean) * inv_std
    hn = hn * gamma_ref[...].astype(jnp.float32) + beta_ref[...].astype(jnp.float32)

    # ELU(alpha=1): x if x > 0 else exp(x) - 1 (clamp exp arg for safety).
    elu = jnp.where(hn > 0.0, hn, jnp.exp(jnp.minimum(hn, 0.0)) - 1.0)

    o_ref[...] = elu.astype(o_ref.dtype)


def _choose_row_tile(M, D_in, H, x_itemsize, w_itemsize, out_itemsize,
                     vmem_budget_bytes=40 * 1024 * 1024):
    """Largest MXU-friendly row tile whose working set fits the VMEM budget."""
    # Fixed: double-buffered weight + (tiny) bias/gamma/beta blocks.
    fixed = 2 * D_in * H * w_itemsize + 8 * H * 4
    # Per row: double-buffered x / out tiles + ~3 f32 (row, H) in-kernel temps.
    per_row = 2 * D_in * x_itemsize + 2 * H * out_itemsize + 3 * H * 4
    avail = max(vmem_budget_bytes - fixed, per_row * 8)
    tm = min(int(avail // per_row), 1024)
    if tm >= 256:
        tm = (tm // 256) * 256     # MXU-aligned on v6e/v7x (2x256x256)
    else:
        tm = max(8, (tm // 8) * 8)  # at minimum sublane-aligned
    # Never larger than the (8-padded) row count.
    m_pad8 = ((M + 7) // 8) * 8
    tm = max(8, min(tm, m_pad8))
    # Prefer >= 2 grid steps on big problems so v7x can shard across its 2 TCs.
    if tm >= M and M >= 512:
        tm = max(256, (((M + 1) // 2 + 7) // 8) * 8)
    return tm


@functools.partial(jax.jit, static_argnames=("tm",))
def mlp_intermediate(hidden_states, w, b, gamma, beta, *, tm=None):
    """hidden_states: [B, S, D_in]; w: [D_in, H]; b, gamma, beta: [H]."""
    B, S, D_in = hidden_states.shape
    H = w.shape[1]
    M = B * S

    if tm is None:
        tm = _choose_row_tile(
            M, D_in, H,
            hidden_states.dtype.itemsize, w.dtype.itemsize,
            hidden_states.dtype.itemsize)

    x2d = hidden_states.reshape(M, D_in)
    # Pad rows to a multiple of tm (padded rows are computed then discarded).
    num_tiles = pl.cdiv(M, tm)
    M_pad = num_tiles * tm
    if M_pad != M:
        x2d = jnp.pad(x2d, ((0, M_pad - M), (0, 0)))

    b2d = b.reshape(1, H)
    g2d = gamma.reshape(1, H)
    beta2d = beta.reshape(1, H)

    # TODO(synk): for non-toy D_in/H the weight should also be tiled over H
    # (with LN done on the full row in a second pass); for these shapes the
    # whole [D_in, H] weight comfortably fits VMEM.

    cost = pl.CostEstimate(
        flops=2 * M_pad * D_in * H,
        transcendentals=M_pad * H,
        bytes_accessed=(M_pad * D_in * x2d.dtype.itemsize
                        + D_in * H * w.dtype.itemsize
                        + M_pad * H * hidden_states.dtype.itemsize),
    )

    out2d = pl.pallas_call(
        mlp_intermediate_kernel,
        out_shape=jax.ShapeDtypeStruct((M_pad, H), hidden_states.dtype),
        grid_spec=pltpu.PrefetchScalarGridSpec(
            num_scalar_prefetch=0,
            grid=(num_tiles,),
            in_specs=[
                pl.BlockSpec((tm, D_in), lambda i: (i, 0)),
                pl.BlockSpec((D_in, H), lambda i: (0, 0)),
                pl.BlockSpec((1, H), lambda i: (0, 0)),
                pl.BlockSpec((1, H), lambda i: (0, 0)),
                pl.BlockSpec((1, H), lambda i: (0, 0)),
            ],
            out_specs=pl.BlockSpec((tm, H), lambda i: (i, 0)),
        ),
        compiler_params=pltpu.CompilerParams(
            dimension_semantics=("parallel",),
            vmem_limit_bytes=48 * 1024 * 1024,
        ),
        cost_estimate=cost,
    )(x2d, w, b2d, g2d, beta2d)

    return out2d[:M].reshape(B, S, H)


def _reference(hidden_states, w, b, gamma, beta):
    h = jnp.einsum("bsd,dh->bsh", hidden_states.astype(jnp.float32),
                   w.astype(jnp.float32)) + b
    mean = jnp.mean(h, axis=-1, keepdims=True)
    var = jnp.mean((h - mean) ** 2, axis=-1, keepdims=True)
    hn = (h - mean) * jax.lax.rsqrt(var + 1e-5) * gamma + beta
    return jnp.where(hn > 0.0, hn, jnp.exp(jnp.minimum(hn, 0.0)) - 1.0)


if __name__ == "__main__":
    batch, seq, input_dim, hidden_dim = 2, 8, 32, 128

    key = jax.random.PRNGKey(0)
    kx, kw, kb, kg, kbeta = jax.random.split(key, 5)

    x = jax.random.normal(kx, (batch, seq, input_dim), dtype=jnp.float32)
    # Deterministic parameter init (synthetic, not a checkpoint load).
    w = jax.random.normal(kw, (input_dim, hidden_dim), dtype=jnp.float32) * 0.05
    b = jax.random.normal(kb, (hidden_dim,), dtype=jnp.float32) * 0.01
    gamma = jnp.ones((hidden_dim,), dtype=jnp.float32)
    beta = jnp.zeros((hidden_dim,), dtype=jnp.float32)
    # TODO(synk): Dropout is defined in __init__ but never applied in forward(),
    # so it is intentionally omitted here.

    out = mlp_intermediate(x, w, b, gamma, beta)
    out = jax.block_until_ready(out)

    ref = _reference(x, w, b, gamma, beta)
    assert out.shape == (batch, seq, hidden_dim)
    assert jnp.allclose(out, ref, atol=1e-4, rtol=1e-4)

    print("KERNEL_OK")
</pallas_src>

<mosaic_0001>
module attributes {stable_mosaic.version = 11 : i64} {
  func.func @mlp_intermediate_kernel(%arg0: i32, %arg1: memref<16x32xf32, #tpu.memory_space<vmem>>, %arg2: memref<32x128xf32, #tpu.memory_space<vmem>>, %arg3: memref<1x128xf32, #tpu.memory_space<vmem>>, %arg4: memref<1x128xf32, #tpu.memory_space<vmem>>, %arg5: memref<1x128xf32, #tpu.memory_space<vmem>>, %arg6: memref<16x128xf32, #tpu.memory_space<vmem>>) attributes {dimension_semantics = [#tpu.dimension_semantics<parallel>], iteration_bounds = array<i64: 1>, scalar_prefetch = 0 : i64, scratch_operands = 0 : i64, tpu.core_type = #tpu.core_type<tc>, window_params = [{transform_indices = @transform_0, window_bounds = array<i64: 16, 32>}, {pipeline_mode = #tpu.pipeline_mode<synchronous>, transform_indices = @transform_1, window_bounds = array<i64: 32, 128>}, {pipeline_mode = #tpu.pipeline_mode<synchronous>, transform_indices = @transform_2, window_bounds = array<i64: 1, 128>}, {pipeline_mode = #tpu.pipeline_mode<synchronous>, transform_indices = @transform_3, window_bounds = array<i64: 1, 128>}, {pipeline_mode = #tpu.pipeline_mode<synchronous>, transform_indices = @transform_4, window_bounds = array<i64: 1, 128>}, {transform_indices = @transform_5, window_bounds = array<i64: 16, 128>}]} {
    %c0 = arith.constant 0 : index
    %c0_0 = arith.constant 0 : index
    %0 = vector.load %arg1[%c0, %c0_0] : memref<16x32xf32, #tpu.memory_space<vmem>>, vector<16x32xf32>
    %c0_1 = arith.constant 0 : index
    %c0_2 = arith.constant 0 : index
    %1 = vector.load %arg2[%c0_1, %c0_2] : memref<32x128xf32, #tpu.memory_space<vmem>>, vector<32x128xf32>
    %cst = arith.constant dense<0.000000e+00> : vector<16x128xf32>
    %2 = tpu.matmul %0, %1, %cst {dimension_numbers = #tpu.dot_dimension_numbers<[1], [0], [0], [1], [0, 0, 1, 1], [], []>} : vector<16x32xf32>, vector<32x128xf32>, vector<16x128xf32> -> vector<16x128xf32>
    %c0_3 = arith.constant 0 : index
    %c0_4 = arith.constant 0 : index
    %3 = vector.load %arg3[%c0_3, %c0_4] : memref<1x128xf32, #tpu.memory_space<vmem>>, vector<1x128xf32>
    %4 = vector.broadcast %3 : vector<1x128xf32> to vector<16x128xf32>
    %5 = arith.addf %2, %4 : vector<16x128xf32>
    %cst_5 = arith.constant dense<0.000000e+00> : vector<16xf32>
    %6 = vector.multi_reduction <add>, %5, %cst_5 [1] : vector<16x128xf32> to vector<16xf32>
    %7 = vector.shape_cast %6 : vector<16xf32> to vector<16x1xf32>
    %8 = arith.mulf %5, %5 : vector<16x128xf32>
    %cst_6 = arith.constant dense<0.000000e+00> : vector<16xf32>
    %9 = vector.multi_reduction <add>, %8, %cst_6 [1] : vector<16x128xf32> to vector<16xf32>
    %10 = vector.shape_cast %9 : vector<16xf32> to vector<16x1xf32>
    %cst_7 = arith.constant 7.812500e-03 : f32
    %11 = vector.broadcast %cst_7 : f32 to vector<16x1xf32>
    %12 = arith.mulf %7, %11 : vector<16x1xf32>
    %cst_8 = arith.constant 7.812500e-03 : f32
    %13 = vector.broadcast %cst_8 : f32 to vector<16x1xf32>
    %14 = arith.mulf %10, %13 : vector<16x1xf32>
    %15 = arith.mulf %12, %12 : vector<16x1xf32>
    %16 = arith.subf %14, %15 : vector<16x1xf32>
    %cst_9 = arith.constant 0.000000e+00 : f32
    %17 = vector.broadcast %cst_9 : f32 to vector<16x1xf32>
    %18 = arith.maximumf %16, %17 : vector<16x1xf32>
    %cst_10 = arith.constant 9.99999974E-6 : f32
    %19 = vector.broadcast %cst_10 : f32 to vector<16x1xf32>
    %20 = arith.addf %18, %19 : vector<16x1xf32>
    %21 = math.rsqrt %20 : vector<16x1xf32>
    %22 = vector.broadcast %12 : vector<16x1xf32> to vector<16x128xf32>
    %23 = arith.subf %5, %22 : vector<16x128xf32>
    %24 = vector.broadcast %21 : vector<16x1xf32> to vector<16x128xf32>
    %25 = arith.mulf %23, %24 : vector<16x128xf32>
    %c0_11 = arith.constant 0 : index
    %c0_12 = arith.constant 0 : index
    %26 = vector.load %arg4[%c0_11, %c0_12] : memref<1x128xf32, #tpu.memory_space<vmem>>, vector<1x128xf32>
    %27 = vector.broadcast %26 : vector<1x128xf32> to vector<16x128xf32>
    %28 = arith.mulf %25, %27 : vector<16x128xf32>
    %c0_13 = arith.constant 0 : index
    %c0_14 = arith.constant 0 : index
    %29 = vector.load %arg5[%c0_13, %c0_14] : memref<1x128xf32, #tpu.memory_space<vmem>>, vector<1x128xf32>
    %30 = vector.broadcast %29 : vector<1x128xf32> to vector<16x128xf32>
    %31 = arith.addf %28, %30 : vector<16x128xf32>
    %cst_15 = arith.constant 0.000000e+00 : f32
    %32 = vector.broadcast %cst_15 : f32 to vector<16x128xf32>
    %33 = arith.cmpf ogt, %31, %32 : vector<16x128xf32>
    %cst_16 = arith.constant 0.000000e+00 : f32
    %34 = vector.broadcast %cst_16 : f32 to vector<16x128xf32>
    %35 = arith.minimumf %31, %34 : vector<16x128xf32>
    %36 = math.exp %35 : vector<16x128xf32>
    %cst_17 = arith.constant 1.000000e+00 : f32
    %37 = vector.broadcast %cst_17 : f32 to vector<16x128xf32>
    %38 = arith.subf %36, %37 : vector<16x128xf32>
    %39 = arith.select %33, %31, %38 : vector<16x128xi1>, vector<16x128xf32>
    %c0_18 = arith.constant 0 : index
    %c0_19 = arith.constant 0 : index
    %40 = vector.load %arg6[%c0_18, %c0_19] : memref<16x128xf32, #tpu.memory_space<vmem>>, vector<16x128xf32>
    tpu.vector_store %arg6[%c0_18, %c0_19], %39 {strides = array<i32>} : memref<16x128xf32, #tpu.memory_space<vmem>>, vector<16x128xf32>,
    return
  }
  func.func @transform_0(%arg0: i32) -> (i32, i32) {
    %c0_i32 = arith.constant 0 : i32
    %c0_i32_0 = arith.constant 0 : i32
    return %arg0, %c0_i32 : i32, i32
  }
  func.func @transform_1(%arg0: i32) -> (i32, i32) {
    %c0_i32 = arith.constant 0 : i32
    %c0_i32_0 = arith.constant 0 : i32
    %c0_i32_1 = arith.constant 0 : i32
    return %c0_i32, %c0_i32_0 : i32, i32
  }
  func.func @transform_2(%arg0: i32) -> (i32, i32) {
    %c0_i32 = arith.constant 0 : i32
    %c0_i32_0 = arith.constant 0 : i32
    %c0_i32_1 = arith.constant 0 : i32
    return %c0_i32, %c0_i32_0 : i32, i32
  }
  func.func @transform_3(%arg0: i32) -> (i32, i32) {
    %c0_i32 = arith.constant 0 : i32
    %c0_i32_0 = arith.constant 0 : i32
    %c0_i32_1 = arith.constant 0 : i32
    return %c0_i32, %c0_i32_0 : i32, i32
  }
  func.func @transform_4(%arg0: i32) -> (i32, i32) {
    %c0_i32 = arith.constant 0 : i32
    %c0_i32_0 = arith.constant 0 : i32
    %c0_i32_1 = arith.constant 0 : i32
    return %c0_i32, %c0_i32_0 : i32, i32
  }
  func.func @transform_5(%arg0: i32) -> (i32, i32) {
    %c0_i32 = arith.constant 0 : i32
    %c0_i32_0 = arith.constant 0 : i32
    return %arg0, %c0_i32 : i32, i32
  }
}

</mosaic_0001>

<bundles_post_ra>
// kernel: mlp_intermediate.1
= control target key start
LH: loop header
LB: loop body
LE: loop exit
PB: predicated region body
PF: predicated region fallthrough
CT: control target
= control target key end

     0   :  { %10 = vsyncpa [#allocation3], 0  ;;  %s349_s0 = inlined_call_operand.hbm [shape: f32[16,32], index: 0, kind: input, shape index: {}]   ;;  %s350_s1 = inlined_call_operand.hbm [shape: f32[32,128], index: 1, kind: input, shape index: {}]   ;;  %s351_s2 = inlined_call_operand.vmem [shape: f32[1,128], index: 2, kind: input, shape index: {}]   ;;  %s352_s3 = inlined_call_operand.vmem [shape: f32[1,128], index: 3, kind: input, shape index: {}]   ;;  %s353_s4 = inlined_call_operand.vmem [shape: f32[1,128], index: 4, kind: input, shape index: {}]   ;;  %s354_s5 = inlined_call_operand.hbm [shape: f32[16,128], index: 5, kind: output, shape index: {}]  }
   0x1   :  { %11 = vsyncpa [#allocation6], 0 }
   0x2   :  { %12 = vsyncpa [#allocation4], 0  ;;  %s17_s20 = sshll.u32 %s349_s0, 4  ;;  %s287_s21 = smov [#allocation2]   ;;  %s18_s20 = int_to_ptr.hbm [resolvable:$true] %s17_s20 }
   0x3   :  { %s19_s22 = sshll.u32 %s287_s21, 4  ;;  %s30_s25 = sshll.u32 %s350_s1, 4  ;;  %s20_s22 = int_to_ptr.vmem [resolvable:$true] %s19_s22  ;;  %s31_s25 = int_to_ptr.hbm [resolvable:$true] %s30_s25 }
   0x4   :  { %s288_s26 = smov 128   ;;  %s289_s27 = smov 8  }
   0x5   :  { %25 = dma.hbm_to_vmem [thread:$0]  %s18_s20, 256, %s20_s22, [#allocation3], %s288_s26, %s288_s26, %s289_s27  }
   0x6   :  { %s290_s28 = smov [#allocation5]  }
   0x7   :  { %s32_s29 = sshll.u32 %s290_s28, 4  ;;  %s33_s29 = int_to_ptr.vmem [resolvable:$true] %s32_s29 }
   0x8   :  { %38 = dma.hbm_to_vmem [thread:$0]  %s31_s25, 512, %s33_s29, [#allocation6], %s288_s26, %s288_s26, %s289_s27  }
   0x9   :  { %281 = dma.done.wait [#allocation3], 256  }
   0xa   :  { %282 = vsyncadd [#allocation3], 4294967040 }
   0xb   :  { %283 = dma.done.wait [#allocation6], 512  }
   0xc   :  { %284 = vsyncadd [#allocation6], 4294966784  ;;  %v58_v0 = vld [vmem:[#allocation5 + $0x18] sm:$0xff]  ;;  %v57_v1 = vld [vmem:[#allocation5 + $0x10] sm:$0xff]  ;;  %vm63_vm0 = vcmask 261120   ;;  %s171_s10 = sshll.u32 %s354_s5, 4  ;;  %s172_s10 = int_to_ptr.hbm [resolvable:$true] %s171_s10 }
   0xd   :  { %82 = vmatpush.msra.mxu0 %v58_v0  ;;  %189 = vmatpush.msra.mxu1 %v58_v0  ;;  %v56_v2 = vld [vmem:[#allocation5 + $0x8] sm:$0xff]  ;;  %v55_v3 = vld [vmem:[#allocation5] sm:$0xff]  ;;  %v53_v4 = vld [vmem:[#allocation2] sm:$0xff] }
   0xe   :  { %v54_v5 = vld [vmem:[#allocation2 + $0x8] sm:$0xff]  ;;  %v198_v6 = vld [vmem:[%s351_s2] ss:$0 sm:$0xff] }
   0xf   :  { %83 = vmatpush.msra.mxu0 %v57_v1  ;;  %190 = vmatpush.msra.mxu1 %v57_v1  ;;  %v199_v38 = vld [vmem:[%s352_s3] ss:$0 sm:$0xff]  ;;  %s291_s3 = smov [#allocation7]  }
  0x10   :  { %v200_v42 = vld [vmem:[%s353_s4] ss:$0 sm:$0xff]  ;;  %s169_s4 = sshll.u32 %s291_s3, 4  ;;  %s170_s4 = int_to_ptr.vmem [resolvable:$true] %s169_s4 }
  0x11   :  { %84 = vmatpush.msra.mxu0 %v56_v2  ;;  %191 = vmatpush.msra.mxu1 %v56_v2 }
  0x13   :  { %85 = vmatpush.msra.mxu0 %v55_v3  ;;  %192 = vmatpush.msra.mxu1 %v55_v3 }
  0x14   :  { %185 = vmatmul.msk.f32.vlgmr.msra.gmra.mxu0 %vm63_vm0, %v53_v4  ;;  %186 = vmatmul.msk.f32.vlgmr.msra.gmra.mxu1 %vm63_vm0, %v54_v5 }
  0x91   :  { %v87_v7 = vpop.f32.mrf.mxu0  ;;  %v90_v9 = vpop.f32.mrf.mxu1 }
  0x92   :  { %v88_v8 = vadd.f32 %v198_v6, %v87_v7  ;;  %v91_v11 = vadd.f32 %v198_v6, %v90_v9 }
  0x94   :  { %93 = vadd.xlane.f32.xlu0 %v88_v8  ;;  %v97_v10 = vmul.f32 %v88_v8, %v88_v8  ;;  %v98_v12 = vmul.f32 %v91_v11, %v91_v11 }
  0x96   :  { %99 = vadd.xlane.f32.xlu1 %v97_v10 }
  0x9c   :  { %95 = vadd.xlane.f32.xlu0 %v91_v11 }
  0x9e   :  { %101 = vadd.xlane.f32.xlu1 %v98_v12 }
 0x107   :  { %v94_v13 = vpop.xlane.xlu0 %93 }
 0x108   :  { %v103_v14 = vmul.f32 0.0078125, %v94_v13 }
 0x109   :  { %v100_v15 = vpop.xlane.xlu1 %99 }
 0x10a   :  { %v107_v16 = vmul.f32 %v103_v14, %v103_v14  ;;  %v105_v17 = vmul.f32 0.0078125, %v100_v15  ;;  %v135_v36 = vsub.f32 %v88_v8, %v103_v14 }
 0x10c   :  { %v109_v18 = vsub.f32 %v105_v17, %v107_v16 }
 0x10e   :  { %v111_v19 = vmax.f32 %v109_v18, 0.0 }
 0x10f   :  { %v96_v20 = vpop.xlane.xlu0 %95 }
 0x110   :  { %v113_v21 = vadd.f32 1e-05, %v111_v19  ;;  %v104_v22 = vmul.f32 0.0078125, %v96_v20 }
 0x111   :  { %v102_v23 = vpop.xlane.xlu1 %101 }
 0x112   :  { %201 = vrsqrt.f32 %v113_v21  ;;  %v108_v24 = vmul.f32 %v104_v22, %v104_v22  ;;  %v106_v25 = vmul.f32 0.0078125, %v102_v23  ;;  %vm121_vm2 = vweird.f32 %v113_v21 }
 0x113   :  { %v136_v49 = vsub.f32 %v91_v11, %v104_v22 }
 0x114   :  { %v110_v26 = vsub.f32 %v106_v25, %v108_v24 }
 0x116   :  { %v112_v27 = vmax.f32 %v110_v26, 0.0 }
 0x118   :  { %v202_v28 = vpop.eup %201  ;;  %v114_v30 = vadd.f32 1e-05, %v112_v27 }
 0x119   :  { %v116_v29 = vmul.f32 %v202_v28, %v113_v21  ;;  %vm122_vm1 = vweird.f32 %v202_v28 }
 0x11a   :  { %203 = vrsqrt.f32 %v114_v30  ;;  %vm123_vm3 = vmor %vm121_vm2, %vm122_vm1  ;;  %vm131_vm5 = vweird.f32 %v114_v30 }
 0x11b   :  { %v117_v31 = vmul.f32 %v202_v28, %v116_v29 }
 0x11d   :  { %v118_v32 = vmul.f32 0.5, %v117_v31 }
 0x11f   :  { %v119_v33 = vsub.f32 1.5, %v118_v32 }
 0x120   :  { %v204_v34 = vpop.eup %203 }
 0x121   :  { %v120_v35 = vmul.f32 %v202_v28, %v119_v33  ;;  %v126_v37 = vmul.f32 %v204_v34, %v114_v30  ;;  %vm132_vm4 = vweird.f32 %v204_v34 }
 0x122   :  { %vm133_vm6 = vmor %vm131_vm5, %vm132_vm4 }
 0x123   :  { %v124_v39 = vsel %vm123_vm3, %v202_v28, %v120_v35  ;;  %v127_v41 = vmul.f32 %v204_v34, %v126_v37 }
 0x124   :  { %v137_v40 = vmul.f32 %v135_v36, %v124_v39 }
 0x125   :  { %v128_v43 = vmul.f32 0.5, %v127_v41 }
 0x126   :  { %v143_v44 = vmul.f32 %v199_v38, %v137_v40 }
 0x127   :  { %v129_v45 = vsub.f32 1.5, %v128_v43 }
 0x128   :  { %v149_v46 = vadd.f32 %v200_v42, %v143_v44 }
 0x129   :  { %v130_v47 = vmul.f32 %v204_v34, %v129_v45 }
 0x12a   :  { %v153_v48 = vmin.f32 %v149_v46, 0.0  ;;  %vm151_vm7 = vcmp.gt.f32.partialorder %v149_v46, 0.0 }
 0x12b   :  { %v134_v50 = vsel %vm133_vm6, %v204_v34, %v130_v47 }
 0x12c   :  { %v155_v51 = vmul.f32 1.442695, %v153_v48  ;;  %v138_v52 = vmul.f32 %v136_v49, %v134_v50 }
 0x12e   :  { %205 = vpow2.f32 %v155_v51  ;;  %v144_v53 = vmul.f32 %v199_v38, %v138_v52 }
 0x130   :  { %v150_v54 = vadd.f32 %v200_v42, %v144_v53 }
 0x132   :  { %v154_v55 = vmin.f32 %v150_v54, 0.0  ;;  %vm152_vm8 = vcmp.gt.f32.partialorder %v150_v54, 0.0 }
 0x134   :  { %v206_v56 = vpop.eup %205  ;;  %v157_v57 = vmul.f32 1.442695, %v154_v55 }
 0x135   :  { %v187_v58 = vadd.f32 -1.0, %v206_v56 }
 0x136   :  { %207 = vpow2.f32 %v157_v57 }
 0x137   :  { %v161_v59 = vsel %vm151_vm7, %v149_v46, %v187_v58 }
 0x138   :  { %163 = vst [vmem:[#allocation7] sm:$0xff] %v161_v59 }
 0x13c   :  { %v208_v60 = vpop.eup %207 }
 0x13d   :  { %v188_v61 = vadd.f32 -1.0, %v208_v60 }
 0x13f   :  { %v162_v62 = vsel %vm152_vm8, %v150_v54, %v188_v61 }
 0x140   :  { %164 = vst [vmem:[#allocation7 + $0x8] sm:$0xff] %v162_v62 }
 0x141   :  { %177 = dma.vmem_to_hbm [thread:$0]  %s170_s4, 256, %s172_s10, [#allocation4], %s288_s26, %s288_s26, %s289_s27  }
 0x142   :  { %285 = dma.done.wait [#allocation4], 256  }
 0x143   :  { %286 = vsyncadd [#allocation4], 4294967040 }
 0x144   :  { %182 = vsyncpa [#allocation3], 1 }
 0x145   :  { %183 = vsyncpa [#allocation6], 1 }
 0x146   :  { %184 = vsyncpa [#allocation4], 1 }

</bundles_post_ra>
